<compile_context>
chip_gen: v5e
topology: v5e:2x2
jax: 0.10.0
libtpu: 0.0.40
codegen_flags: <defaults>
</compile_context>

<pallas_src>
import jax
import jax.numpy as jnp
from jax import lax
from jax.experimental import pallas as pl
from jax.experimental.pallas import tpu as pltpu

_EPS = 1e-12  # matches torch.nn.functional.normalize default


def _l2_normalize(h, eps=_EPS):
    # F.normalize(p=2, dim=1): x / max(||x||_2, eps)  ==  x * rsqrt(max(sum(x*x), eps^2))
    # (clamp the sum of squares at eps^2, not the norm at eps -> identical semantics,
    #  single EUP rsqrt instead of sqrt + divide)
    sumsq = jnp.sum(h * h, axis=1, keepdims=True)
    return h * lax.rsqrt(jnp.maximum(sumsq, eps * eps))


def posereg_kernel(x_ref, w1_ref, b1_ref, w2_ref, b2_ref, w3_ref, b3_ref, o_ref):
    cdt = w1_ref.dtype  # MXU operand dtype (bf16 by default, f32 for the validation path)

    # fc1 -> normalize -> relu     (dropout is identity for drop_prob=0 / eval)
    h = jnp.dot(x_ref[...], w1_ref[...], preferred_element_type=jnp.float32) + b1_ref[...]
    h = jnp.maximum(_l2_normalize(h), 0.0)

    # fc2 -> normalize -> relu
    h = jnp.dot(h.astype(cdt), w2_ref[...], preferred_element_type=jnp.float32) + b2_ref[...]
    h = jnp.maximum(_l2_normalize(h), 0.0)

    # fc3 -> normalize -> tanh
    h = jnp.dot(h.astype(cdt), w3_ref[...], preferred_element_type=jnp.float32) + b3_ref[...]
    o_ref[...] = jnp.tanh(_l2_normalize(h)).astype(o_ref.dtype)


def _round_up(x, m):
    return (x + m - 1) // m * m


def _pick_tile_m(m_rows):
    # 256 is the sweet spot for v6e/v7x (2x256 MXU); also plenty for v5e (4x128 MXU).
    tile = min(_round_up(m_rows, 8), 256)
    # Keep the parallel grid at >= 2 steps when possible so both v7x TensorCores get work.
    if m_rows > 8:
        tile = min(tile, _round_up(pl.cdiv(m_rows, 2), 8))
    return max(tile, 8)


def _vmem_limit_bytes(tile_m, dim_in, n_units, n_out, act_bytes):
    # double-buffered x/out tiles + double-buffered weights/biases + f32 intermediates
    io = 2 * tile_m * dim_in * act_bytes + 2 * tile_m * n_out * 4
    w = 2 * (dim_in * n_units + n_units * n_units + n_units * n_out) * act_bytes
    b = 2 * (2 * n_units + n_out) * 4
    interm = 4 * tile_m * max(n_units, n_out) * 4
    need = 2 * (io + w + b + interm)  # generous headroom for spills / compiler scratch
    return int(min(max(need, 16 << 20), 48 << 20))  # stay under v7x's 64 MiB physical VMEM


def pose_reg_head(x, params, *, dim_in, tile_m=None, compute_dtype=jnp.bfloat16):
    """x: any shape with trailing elements divisible by dim_in (mimics x.view(-1, dim_in))."""
    w1, b1, w2, b2, w3, b3 = params
    n_units = w1.shape[1]
    n_out = w3.shape[1]

    x_flat = x.reshape(-1, dim_in)
    M = x_flat.shape[0]

    if tile_m is None:
        tile_m = _pick_tile_m(M)
    tile_m = max(8, _round_up(tile_m, 8))

    # Pad rows up to a multiple of the tile (zero rows are harmless: rsqrt clamp -> 0 output).
    M_pad = _round_up(M, tile_m)
    if M_pad != M:
        x_flat = jnp.pad(x_flat, ((0, M_pad - M), (0, 0)))

    # Feed the MXU bf16 (or f32 for validation); biases stay f32, accumulation is f32.
    x_flat = x_flat.astype(compute_dtype)
    w1c = w1.astype(compute_dtype)
    w2c = w2.astype(compute_dtype)
    w3c = w3.astype(compute_dtype)
    act_bytes = jnp.dtype(compute_dtype).itemsize

    grid = (M_pad // tile_m,)
    full = lambda i: (0, 0)  # weights / biases: same (whole) block for every row tile

    out = pl.pallas_call(
        posereg_kernel,
        out_shape=jax.ShapeDtypeStruct((M_pad, n_out), jnp.float32),
        grid=grid,
        in_specs=[
            pl.BlockSpec((tile_m, dim_in), lambda i: (i, 0)),   # x row tile
            pl.BlockSpec((dim_in, n_units), full),              # W1 (full, grid-invariant)
            pl.BlockSpec((1, n_units), full),                   # b1
            pl.BlockSpec((n_units, n_units), full),             # W2 (full, grid-invariant)
            pl.BlockSpec((1, n_units), full),                   # b2
            pl.BlockSpec((n_units, n_out), full),               # W3 (full, grid-invariant)
            pl.BlockSpec((1, n_out), full),                     # b3
        ],
        out_specs=pl.BlockSpec((tile_m, n_out), lambda i: (i, 0)),
        compiler_params=pltpu.CompilerParams(
            dimension_semantics=("parallel",),
            vmem_limit_bytes=_vmem_limit_bytes(tile_m, dim_in, n_units, n_out, act_bytes),
        ),
    )(x_flat, w1c, b1, w2c, b2, w3c, b3)

    return out[:M]


def init_params(key, dim_in, dim_out, num_units):
    """Same shapes as PoseRegHead.__init__: weights ~ N(0, 0.001), biases zero.
    Weights are stored already transposed to [in, out] for the kernel."""
    d_out4 = dim_out * 4
    k1, k2, k3 = jax.random.split(key, 3)
    w1 = 0.001 * jax.random.normal(k1, (dim_in, num_units), jnp.float32)
    w2 = 0.001 * jax.random.normal(k2, (num_units, num_units), jnp.float32)
    w3 = 0.001 * jax.random.normal(k3, (num_units, d_out4), jnp.float32)
    b1 = jnp.zeros((1, num_units), jnp.float32)
    b2 = jnp.zeros((1, num_units), jnp.float32)
    b3 = jnp.zeros((1, d_out4), jnp.float32)
    return (w1, b1, w2, b2, w3, b3)


def reference_forward(x, params, dim_in):
    """Pure-JAX f32 reference mirroring the PyTorch forward (eval mode, drop_prob=0)."""
    w1, b1, w2, b2, w3, b3 = params
    h = x.reshape(-1, dim_in)
    h = h @ w1 + b1
    h = jnp.maximum(_l2_normalize(h), 0.0)
    h = h @ w2 + b2
    h = jnp.maximum(_l2_normalize(h), 0.0)
    h = h @ w3 + b3
    h = _l2_normalize(h)
    return jnp.tanh(h)


if __name__ == "__main__":
    # Small shapes: dim_in=128, num_units=256, dim_out=32 (-> 128 outputs), 16 rows total.
    dim_in, dim_out, num_units = 128, 32, 256
    key = jax.random.PRNGKey(0)
    kp, kx = jax.random.split(key)

    params = init_params(kp, dim_in, dim_out, num_units)
    x = jax.random.normal(kx, (2, 8, dim_in), jnp.float32)  # reshaped to (-1, dim_in) inside

    y_ref = reference_forward(x, params, dim_in)

    # f32 validation path: tight tolerance against the reference.
    y_f32 = jax.block_until_ready(
        pose_reg_head(x, params, dim_in=dim_in, compute_dtype=jnp.float32))
    assert y_f32.shape == (16, dim_out * 4)
    assert jnp.allclose(y_f32, y_ref, atol=1e-5, rtol=1e-5)

    # Default bf16-MXU path (production): looser tolerance (bf16 operand quantization).
    y_bf16 = jax.block_until_ready(pose_reg_head(x, params, dim_in=dim_in))
    assert y_bf16.shape == (16, dim_out * 4)
    assert jnp.allclose(y_bf16, y_ref, atol=1e-2, rtol=5e-2)

    print("KERNEL_OK")
</pallas_src>

<mosaic_0001>
module attributes {stable_mosaic.version = 11 : i64} {
  func.func @posereg_kernel(%arg0: i32, %arg1: memref<8x128xf32, #tpu.memory_space<vmem>>, %arg2: memref<128x256xf32, #tpu.memory_space<vmem>>, %arg3: memref<1x256xf32, #tpu.memory_space<vmem>>, %arg4: memref<256x256xf32, #tpu.memory_space<vmem>>, %arg5: memref<1x256xf32, #tpu.memory_space<vmem>>, %arg6: memref<256x128xf32, #tpu.memory_space<vmem>>, %arg7: memref<1x128xf32, #tpu.memory_space<vmem>>, %arg8: memref<8x128xf32, #tpu.memory_space<vmem>>) attributes {dimension_semantics = [#tpu.dimension_semantics<parallel>], iteration_bounds = array<i64: 2>, scalar_prefetch = 0 : i64, scratch_operands = 0 : i64, tpu.core_type = #tpu.core_type<tc>, window_params = [{transform_indices = @transform_0, window_bounds = array<i64: 8, 128>}, {pipeline_mode = #tpu.pipeline_mode<synchronous>, transform_indices = @transform_1, window_bounds = array<i64: 128, 256>}, {pipeline_mode = #tpu.pipeline_mode<synchronous>, transform_indices = @transform_2, window_bounds = array<i64: 1, 256>}, {pipeline_mode = #tpu.pipeline_mode<synchronous>, transform_indices = @transform_3, window_bounds = array<i64: 256, 256>}, {pipeline_mode = #tpu.pipeline_mode<synchronous>, transform_indices = @transform_4, window_bounds = array<i64: 1, 256>}, {pipeline_mode = #tpu.pipeline_mode<synchronous>, transform_indices = @transform_5, window_bounds = array<i64: 256, 128>}, {pipeline_mode = #tpu.pipeline_mode<synchronous>, transform_indices = @transform_6, window_bounds = array<i64: 1, 128>}, {transform_indices = @transform_7, window_bounds = array<i64: 8, 128>}]} {
    %c0 = arith.constant 0 : index
    %c0_0 = arith.constant 0 : index
    %0 = vector.load %arg1[%c0, %c0_0] : memref<8x128xf32, #tpu.memory_space<vmem>>, vector<8x128xf32>
    %c0_1 = arith.constant 0 : index
    %c0_2 = arith.constant 0 : index
    %1 = vector.load %arg2[%c0_1, %c0_2] : memref<128x256xf32, #tpu.memory_space<vmem>>, vector<128x256xf32>
    %cst = arith.constant dense<0.000000e+00> : vector<8x256xf32>
    %2 = tpu.matmul %0, %1, %cst {dimension_numbers = #tpu.dot_dimension_numbers<[1], [0], [0], [1], [0, 0, 1, 1], [], []>} : vector<8x128xf32>, vector<128x256xf32>, vector<8x256xf32> -> vector<8x256xf32>
    %c0_3 = arith.constant 0 : index
    %c0_4 = arith.constant 0 : index
    %3 = vector.load %arg3[%c0_3, %c0_4] : memref<1x256xf32, #tpu.memory_space<vmem>>, vector<1x256xf32>
    %4 = vector.broadcast %3 : vector<1x256xf32> to vector<8x256xf32>
    %5 = arith.addf %2, %4 : vector<8x256xf32>
    %6 = arith.mulf %5, %5 : vector<8x256xf32>
    %cst_5 = arith.constant dense<0.000000e+00> : vector<8xf32>
    %7 = vector.multi_reduction <add>, %6, %cst_5 [1] : vector<8x256xf32> to vector<8xf32>
    %8 = vector.shape_cast %7 : vector<8xf32> to vector<8x1xf32>
    %cst_6 = arith.constant 1.000000e-24 : f32
    %9 = vector.broadcast %cst_6 : f32 to vector<8x1xf32>
    %10 = arith.maximumf %8, %9 : vector<8x1xf32>
    %11 = math.rsqrt %10 : vector<8x1xf32>
    %12 = vector.broadcast %11 : vector<8x1xf32> to vector<8x256xf32>
    %13 = arith.mulf %5, %12 : vector<8x256xf32>
    %cst_7 = arith.constant 0.000000e+00 : f32
    %14 = vector.broadcast %cst_7 : f32 to vector<8x256xf32>
    %15 = arith.maximumf %13, %14 : vector<8x256xf32>
    %c0_8 = arith.constant 0 : index
    %c0_9 = arith.constant 0 : index
    %16 = vector.load %arg4[%c0_8, %c0_9] : memref<256x256xf32, #tpu.memory_space<vmem>>, vector<256x256xf32>
    %cst_10 = arith.constant dense<0.000000e+00> : vector<8x256xf32>
    %17 = tpu.matmul %15, %16, %cst_10 {dimension_numbers = #tpu.dot_dimension_numbers<[1], [0], [0], [1], [0, 0, 1, 1], [], []>} : vector<8x256xf32>, vector<256x256xf32>, vector<8x256xf32> -> vector<8x256xf32>
    %c0_11 = arith.constant 0 : index
    %c0_12 = arith.constant 0 : index
    %18 = vector.load %arg5[%c0_11, %c0_12] : memref<1x256xf32, #tpu.memory_space<vmem>>, vector<1x256xf32>
    %19 = vector.broadcast %18 : vector<1x256xf32> to vector<8x256xf32>
    %20 = arith.addf %17, %19 : vector<8x256xf32>
    %21 = arith.mulf %20, %20 : vector<8x256xf32>
    %cst_13 = arith.constant dense<0.000000e+00> : vector<8xf32>
    %22 = vector.multi_reduction <add>, %21, %cst_13 [1] : vector<8x256xf32> to vector<8xf32>
    %23 = vector.shape_cast %22 : vector<8xf32> to vector<8x1xf32>
    %cst_14 = arith.constant 1.000000e-24 : f32
    %24 = vector.broadcast %cst_14 : f32 to vector<8x1xf32>
    %25 = arith.maximumf %23, %24 : vector<8x1xf32>
    %26 = math.rsqrt %25 : vector<8x1xf32>
    %27 = vector.broadcast %26 : vector<8x1xf32> to vector<8x256xf32>
    %28 = arith.mulf %20, %27 : vector<8x256xf32>
    %cst_15 = arith.constant 0.000000e+00 : f32
    %29 = vector.broadcast %cst_15 : f32 to vector<8x256xf32>
    %30 = arith.maximumf %28, %29 : vector<8x256xf32>
    %c0_16 = arith.constant 0 : index
    %c0_17 = arith.constant 0 : index
    %31 = vector.load %arg6[%c0_16, %c0_17] : memref<256x128xf32, #tpu.memory_space<vmem>>, vector<256x128xf32>
    %cst_18 = arith.constant dense<0.000000e+00> : vector<8x128xf32>
    %32 = tpu.matmul %30, %31, %cst_18 {dimension_numbers = #tpu.dot_dimension_numbers<[1], [0], [0], [1], [0, 0, 1, 1], [], []>} : vector<8x256xf32>, vector<256x128xf32>, vector<8x128xf32> -> vector<8x128xf32>
    %c0_19 = arith.constant 0 : index
    %c0_20 = arith.constant 0 : index
    %33 = vector.load %arg7[%c0_19, %c0_20] : memref<1x128xf32, #tpu.memory_space<vmem>>, vector<1x128xf32>
    %34 = vector.broadcast %33 : vector<1x128xf32> to vector<8x128xf32>
    %35 = arith.addf %32, %34 : vector<8x128xf32>
    %36 = arith.mulf %35, %35 : vector<8x128xf32>
    %cst_21 = arith.constant dense<0.000000e+00> : vector<8xf32>
    %37 = vector.multi_reduction <add>, %36, %cst_21 [1] : vector<8x128xf32> to vector<8xf32>
    %38 = vector.shape_cast %37 : vector<8xf32> to vector<8x1xf32>
    %cst_22 = arith.constant 1.000000e-24 : f32
    %39 = vector.broadcast %cst_22 : f32 to vector<8x1xf32>
    %40 = arith.maximumf %38, %39 : vector<8x1xf32>
    %41 = math.rsqrt %40 : vector<8x1xf32>
    %42 = vector.broadcast %41 : vector<8x1xf32> to vector<8x128xf32>
    %43 = arith.mulf %35, %42 : vector<8x128xf32>
    %44 = math.tanh %43 : vector<8x128xf32>
    %c0_23 = arith.constant 0 : index
    %c0_24 = arith.constant 0 : index
    %45 = vector.load %arg8[%c0_23, %c0_24] : memref<8x128xf32, #tpu.memory_space<vmem>>, vector<8x128xf32>
    tpu.vector_store %arg8[%c0_23, %c0_24], %44 {strides = array<i32>} : memref<8x128xf32, #tpu.memory_space<vmem>>, vector<8x128xf32>,
    return
  }
  func.func @transform_0(%arg0: i32) -> (i32, i32) {
    %c0_i32 = arith.constant 0 : i32
    %c0_i32_0 = arith.constant 0 : i32
    return %arg0, %c0_i32 : i32, i32
  }
  func.func @transform_1(%arg0: i32) -> (i32, i32) {
    %c0_i32 = arith.constant 0 : i32
    %c0_i32_0 = arith.constant 0 : i32
    %c0_i32_1 = arith.constant 0 : i32
    return %c0_i32, %c0_i32_0 : i32, i32
  }
  func.func @transform_2(%arg0: i32) -> (i32, i32) {
    %c0_i32 = arith.constant 0 : i32
    %c0_i32_0 = arith.constant 0 : i32
    %c0_i32_1 = arith.constant 0 : i32
    return %c0_i32, %c0_i32_0 : i32, i32
  }
  func.func @transform_3(%arg0: i32) -> (i32, i32) {
    %c0_i32 = arith.constant 0 : i32
    %c0_i32_0 = arith.constant 0 : i32
    %c0_i32_1 = arith.constant 0 : i32
    return %c0_i32, %c0_i32_0 : i32, i32
  }
  func.func @transform_4(%arg0: i32) -> (i32, i32) {
    %c0_i32 = arith.constant 0 : i32
    %c0_i32_0 = arith.constant 0 : i32
    %c0_i32_1 = arith.constant 0 : i32
    return %c0_i32, %c0_i32_0 : i32, i32
  }
  func.func @transform_5(%arg0: i32) -> (i32, i32) {
    %c0_i32 = arith.constant 0 : i32
    %c0_i32_0 = arith.constant 0 : i32
    %c0_i32_1 = arith.constant 0 : i32
    return %c0_i32, %c0_i32_0 : i32, i32
  }
  func.func @transform_6(%arg0: i32) -> (i32, i32) {
    %c0_i32 = arith.constant 0 : i32
    %c0_i32_0 = arith.constant 0 : i32
    %c0_i32_1 = arith.constant 0 : i32
    return %c0_i32, %c0_i32_0 : i32, i32
  }
  func.func @transform_7(%arg0: i32) -> (i32, i32) {
    %c0_i32 = arith.constant 0 : i32
    %c0_i32_0 = arith.constant 0 : i32
    return %arg0, %c0_i32 : i32, i32
  }
}

</mosaic_0001>

<bundles_post_ra>
// kernel: tpu_custom_call.1
= control target key start
LH: loop header
LB: loop body
LE: loop exit
PB: predicated region body
PF: predicated region fallthrough
CT: control target
= control target key end

     0   :  { %s1440_s0 = inlined_call_operand.hbm [shape: f32[16,128], index: 0, kind: input, shape index: {}]   ;;  %s1441_s1 = inlined_call_operand.hbm [shape: f32[128,256], index: 1, kind: input, shape index: {}]   ;;  %s1442_s2 = inlined_call_operand.hbm [shape: f32[1,256], index: 2, kind: input, shape index: {}]   ;;  %s1443_s3 = inlined_call_operand.hbm [shape: f32[256,256], index: 3, kind: input, shape index: {}]   ;;  %s1444_s4 = inlined_call_operand.vmem [shape: f32[1,256], index: 4, kind: input, shape index: {}]   ;;  %s1445_s5 = inlined_call_operand.hbm [shape: f32[256,128], index: 5, kind: input, shape index: {}]   ;;  %s1446_s6 = inlined_call_operand.vmem [shape: f32[1,128], index: 6, kind: input, shape index: {}]   ;;  %s1447_s7 = inlined_call_operand.hbm [shape: f32[16,128], index: 7, kind: output, shape index: {}]  }
   0x1   :  { %1448 = sst [smem:[#allocation16_spill]] %s1441_s1 }
   0x2   :  { %1449 = sst [smem:[#allocation17_spill]] %s1442_s2 }
   0x3   :  { %12 = vsyncpa [#allocation3], 0 }
   0x4   :  { %14 = vsyncpa [#allocation3 + $0x1], 0 }
   0x5   :  { %15 = vsyncpa [#allocation6], 0 }
   0x6   :  { %16 = vsyncpa [#allocation9], 0 }
   0x7   :  { %17 = vsyncpa [#allocation4], 0 }
   0x8   :  { %19 = vsyncpa [#allocation4 + $0x1], 0  ;;  %s1240_s24 = smov 0   ;;  %s1242_s25 = smov 0  }
   0x9   :  { %s1244_s26 = smov 0   ;;  %s1246_s27 = smov 0  }
   0xa LB: > { %s1450_s1 = sld [smem:[#allocation16_spill]]  ;;  %s1264_s8 = sadd.s32 4294967295, %s1190_s27   ;;  %s1190_s27 = sphi %s1246_s27, %s1463_s27   ;;  %s1186_s26 = sphi %s1244_s26, %s1462_s26   ;;  %s1182_s25 = sphi %s1242_s25, %s1461_s25   ;;  %s1178_s24 = sphi %s1240_s24, %s1460_s24  }
   0xb   : > { %p847_p0 = scmp.ge.s32.totalorder %s1190_s27, 1  ;;  %p46_p1 = scmp.eq.s32.totalorder %s1264_s8, 0 }
   0xc   : > { %p208_p2 = scmp.lt.s32.totalorder %s1190_s27, 3  ;;  %s1192_s10 = smov [#allocation5]  }
   0xd   : > { %s221_s11 = sshll.u32 %s1192_s10, 4  ;;  %s245_s14 = sshll.u32 %s1443_s3, 4  ;;  %s222_s11 = int_to_ptr.vmem [resolvable:$true] %s221_s11  ;;  %s246_s14 = int_to_ptr.hbm [resolvable:$true] %s245_s14 }
   0xe   : > { %p1269_p3 = pnand %p847_p0, %p208_p2  ;;  %s1453_s2 = sld [smem:[#allocation17_spill]] }
   0xf   : > { %s1193_s19 = smov [#allocation8]   ;;  %s1194_s21 = smov 256  }
  0x10   : > { %s219_s30 = sshll.u32 %s1450_s1, 4  ;;  %p886_p4 = pneg %p1269_p3  ;;  %s220_s30 = int_to_ptr.hbm [resolvable:$true] %s219_s30 }
  0x11   : > { %s247_s20 = sshll.u32 %s1193_s19, 4  ;;  %s1195_s22 = smov 16   ;;  %s248_s20 = int_to_ptr.vmem [resolvable:$true] %s247_s20 }
  0x12   : > { %p1281_p6 = pnand %p886_p4, %p46_p1  ;;  %s262_s29 = sshll.u32 %s1445_s5, 4  ;;  %s263_s29 = int_to_ptr.hbm [resolvable:$true] %s262_s29 }
  0x13   : > { %s1196_s10 = smov [#allocation7]   ;;  %s1198_s13 = smov 128  }
  0x14   : > { %s234_s18 = sshll.u32 %s1453_s2, 4  ;;  %s236_s12 = sshll.u32 %s1196_s10, 4  ;;  %s235_s18 = int_to_ptr.hbm [resolvable:$true] %s234_s18  ;;  %s237_s12 = int_to_ptr.vmem [resolvable:$true] %s236_s12 }
  0x15   : > { %889 = dma.hbm_to_vmem [thread:$0]  (!%p1281_p6), %s220_s30, 4096, %s222_s11, [#allocation6], %s1194_s21, %s1194_s21, %s1195_s22  }
  0x16   : > { %895 = dma.hbm_to_vmem [thread:$0]  (!%p1281_p6), %s246_s14, 8192, %s248_s20, [#allocation9], %s1194_s21, %s1194_s21, %s1195_s22  }
  0x17   : > { %892 = dma.hbm_to_vmem [thread:$0]  (!%p1281_p6), %s235_s18, 32, %s237_s12, [#allocation6]  }
  0x18   : > { %s1197_s30 = smov [#allocation10]   ;;  %s1199_s14 = smov 8  }
  0x19   : > { %s264_s11 = sshll.u32 %s1197_s30, 4  ;;  %s846_s16 = sadd.s32 4294967294, %s1190_s27   ;;  %s265_s11 = int_to_ptr.vmem [resolvable:$true] %s264_s11 }
  0x1a   : > { %898 = dma.hbm_to_vmem [thread:$0]  (!%p1281_p6), %s263_s29, 4096, %s265_s11, [#allocation9], %s1198_s13, %s1198_s13, %s1199_s14  }
  0x1b   : > { %s1301_s17 = sadd.s32 1, %s1190_s27   ;;  %s32_s20 = sadd.s32 1, %s1186_s26 }
  0x1c   : > { %s29_s19 = ssub.s32 %s1190_s27, %s1301_s17  ;;  %p39_p8 = scmp.ne.s32.totalorder %s1186_s26, %s1182_s25 }
  0x1d   : > { %p30_p7 = scmp.eq.s32.totalorder %s29_s19, 0  ;;  %p40_p9 = scmp.eq.s32.totalorder %s1190_s27, 0 }
  0x1e   : > { %p45_p10 = scmp.ne.s32.totalorder %s1182_s25, %s1178_s24  ;;  %p195_p13 = scmp.eq.s32.totalorder %s1264_s8, 1 }
  0x1f   : > { %s1312_s18 = scalar_select %p30_p7, %s1186_s26, %s32_s20  }
  0x20   : > { %p1314_p11 = por %p40_p9, %p39_p8  ;;  %p1320_p12 = por %p46_p1, %p45_p10 }
  0x21   : > { %p201_p0 = scmp.eq.s32.totalorder %s846_s16, 1  ;;  %p911_p2 = scmp.lt.s32.totalorder %s1190_s27, 2 }
  0x22   : > { %s281_s22 = sand.u32 1, %s1186_s26   ;;  %p1327_p4 = por %p195_p13, %p39_p8 }
  0x23   : > { %p1331_p6 = por %p201_p0, %p45_p10  ;;  %s853_s29 = sshll.u32 %s281_s22, 3 }
  0x24   : > { %s854_s10 = sshll.u32 %s1190_s27, 3  ;;  %s285_s13 = scalar_lea.vmem [#allocation2], %s853_s29 }
  0x25   : > { %s289_s11 = scalar_lea.hbm %s1440_s0, %s854_s10  ;;  %s293_s14 = sshll.u32 %s285_s13, 4  ;;  %s294_s14 = int_to_ptr.vmem [resolvable:$true] %s293_s14 }
  0x26   : > { %s291_s19 = sshll.u32 %s289_s11, 4  ;;  %p1341_p7 = pnand %p911_p2, %p1314_p11  ;;  %s292_s19 = int_to_ptr.hbm [resolvable:$true] %s291_s19 }
  0x27   : > { %s282_s20 = scalar_lea.sflag [#allocation3], %s281_s22  ;;  %s1086_s1 = sshra.s32 %s292_s19, 4  ;;  %s1087_s1 = int_to_ptr.hbm [resolvable:$true] %s1086_s1 }
  0x28   : > { %s1088_s2 = scalar_lea.hbm %s1087_s1, 8  ;;  %p1090_p9 = pneg %p1341_p7 }
  0x29   : > { %p1089_p8 = scmp.ne.s32.totalorder %s1087_s1, %s1088_s2  ;;  %s1093_s12 = scalar_lea.hbm %s1440_s0, 16 }
  0x2a   : > { %p1094_p11 = scmp.lt.s32.totalorder %s1087_s1, %s1440_s0  ;;  %p1095_p0 = scmp.lt.s32.totalorder %s1093_s12, %s1088_s2 }
  0x2b   : > { %p1091_p10 = pnand %p1090_p9, %p1089_p8 }
  0x2c   : > { %p1096_p2 = por %p1095_p0, %p1094_p11 }
  0x2d   : > { %p1092_p13 = pneg %p1091_p10 }
  0x2f   : > { %p1097_p5 = pnand %p1096_p2, %p1092_p13 }
  0x31   : > { %1100 = shalt.err (!%p1097_p5)
}
  0x32   : > { %902 = dma.hbm_to_vmem [thread:$0]  (!%p1341_p7), %s292_s19, 128, %s294_s14, %s282_s20  }
  0x33   : > { %302 = sbr.rel (%p1269_p3) target bundleno = 931 (0x3a3), region = 48  ;;  %s1358_s22 = sand.u32 (!%p1269_p3), 1, %s1182_s25  }
  0x34   : > { %s856_s11 = sshll.u32 (!%p1269_p3), %s1358_s22, 3  ;;  %s305_s13 = scalar_lea.sflag (!%p1269_p3), [#allocation3], %s1358_s22 }
  0x35   : > { %s1364_s1 = scalar_lea.vmem (!%p1269_p3), [#allocation2], %s856_s11 }
  0x38   : > { %1161 = dma.done.wait (%p1320_p12), %s305_s13, 128  }
  0x39   : > { %1163 = vsyncadd (%p1320_p12), %s305_s13, 4294967168 }
  0x3a   : > { %1165 = dma.done.wait (%p46_p1), [#allocation6], 4128  }
  0x3b   : > { %1167 = vsyncadd (%p46_p1), [#allocation6], 4294963168 }
  0x3c   : > { %1169 = dma.done.wait (%p46_p1), [#allocation9], 12288  }
  0x3d   : > { %1171 = vsyncadd (%p46_p1), [#allocation9], 4294955008  ;;  %v391_v0 = vld [vmem:[#allocation5 + $0xf0] sm:$0xff]  ;;  %v392_v1 = vld [vmem:[#allocation5 + $0xf8] sm:$0xff]  ;;  %s863_s19 = sshll.u32 %s1264_s8, 3  ;;  %s359_s10 = scalar_lea.vmem [#allocation11], %s856_s11 }
  0x3e   : > { %v389_v2 = vld [vmem:[#allocation5 + $0xe0] sm:$0xff]  ;;  %399 = vmatpush.msra.mxu0 %v391_v0  ;;  %419 = vmatpush.msra.mxu1 %v392_v1  ;;  %v390_v3 = vld [vmem:[#allocation5 + $0xe8] sm:$0xff]  ;;  %v387_v4 = vld [vmem:[#allocation5 + $0xd0] sm:$0xff]  ;;  %s733_s29 = scalar_lea.hbm %s1447_s7, %s863_s19  ;;  %s735_s12 = sshll.u32 %s359_s10, 4  ;;  %s736_s12 = int_to_ptr.vmem [resolvable:$true] %s735_s12 }
  0x3f   : > { %v388_v5 = vld [vmem:[#allocation5 + $0xd8] sm:$0xff]  ;;  %v385_v6 = vld [vmem:[#allocation5 + $0xc0] sm:$0xff]  ;;  %v386_v7 = vld [vmem:[#allocation5 + $0xc8] sm:$0xff]  ;;  %s737_s30 = sshll.u32 %s733_s29, 4  ;;  %s723_s21 = scalar_lea.sflag [#allocation4], %s1358_s22  ;;  %s738_s30 = int_to_ptr.hbm [resolvable:$true] %s737_s30 }
  0x40   : > { %400 = vmatpush.msra.mxu0 %v389_v2  ;;  %420 = vmatpush.msra.mxu1 %v390_v3  ;;  %v383_v8 = vld [vmem:[#allocation5 + $0xb0] sm:$0xff]  ;;  %v384_v9 = vld [vmem:[#allocation5 + $0xb8] sm:$0xff]  ;;  %v381_v10 = vld [vmem:[#allocation5 + $0xa0] sm:$0xff]  ;;  %s1130_s13 = sshra.s32 %s738_s30, 4  ;;  %s1136_s9 = scalar_lea.hbm %s1447_s7, 16  ;;  %s1131_s13 = int_to_ptr.hbm [resolvable:$true] %s1130_s13 }
  0x41   : > { %v382_v11 = vld [vmem:[#allocation5 + $0xa8] sm:$0xff]  ;;  %v379_v12 = vld [vmem:[#allocation5 + $0x90] sm:$0xff]  ;;  %v380_v13 = vld [vmem:[#allocation5 + $0x98] sm:$0xff]  ;;  %s1132_s8 = scalar_lea.hbm %s1131_s13, 8  ;;  %p1137_p12 = scmp.lt.s32.totalorder %s1131_s13, %s1447_s7 }
  0x42   : > { %401 = vmatpush.msra.mxu0 %v387_v4  ;;  %421 = vmatpush.msra.mxu1 %v388_v5  ;;  %v377_v14 = vld [vmem:[#allocation5 + $0x80] sm:$0xff]  ;;  %v378_v15 = vld [vmem:[#allocation5 + $0x88] sm:$0xff]  ;;  %v375_v16 = vld [vmem:[#allocation5 + $0x70] sm:$0xff]  ;;  %p1133_p1 = scmp.ne.s32.totalorder %s1131_s13, %s1132_s8  ;;  %p1138_p7 = scmp.lt.s32.totalorder %s1136_s9, %s1132_s8 }
  0x43   : > { %v376_v17 = vld [vmem:[#allocation5 + $0x78] sm:$0xff]  ;;  %v373_v18 = vld [vmem:[#allocation5 + $0x60] sm:$0xff]  ;;  %v374_v19 = vld [vmem:[#allocation5 + $0x68] sm:$0xff] }
  0x44   : > { %402 = vmatpush.msra.mxu0 %v385_v6  ;;  %422 = vmatpush.msra.mxu1 %v386_v7  ;;  %v371_v20 = vld [vmem:[#allocation5 + $0x50] sm:$0xff]  ;;  %v372_v21 = vld [vmem:[#allocation5 + $0x58] sm:$0xff]  ;;  %v369_v22 = vld [vmem:[#allocation5 + $0x40] sm:$0xff]  ;;  %p1134_p3 = pnand %p1133_p1, %p1327_p4  ;;  %p1139_p8 = por %p1138_p7, %p1137_p12 }
  0x45   : > { %v370_v23 = vld [vmem:[#allocation5 + $0x48] sm:$0xff]  ;;  %v367_v24 = vld [vmem:[#allocation5 + $0x30] sm:$0xff]  ;;  %v368_v25 = vld [vmem:[#allocation5 + $0x38] sm:$0xff] }
  0x46   : > { %403 = vmatpush.msra.mxu0 %v383_v8  ;;  %423 = vmatpush.msra.mxu1 %v384_v9  ;;  %v365_v26 = vld [vmem:[#allocation5 + $0x20] sm:$0xff]  ;;  %v366_v27 = vld [vmem:[#allocation5 + $0x28] sm:$0xff]  ;;  %v363_v28 = vld [vmem:[#allocation5 + $0x10] sm:$0xff]  ;;  %p1135_p5 = pneg %p1134_p3 }
  0x47   : > { %v364_v29 = vld [vmem:[#allocation5 + $0x18] sm:$0xff]  ;;  %v361_v30 = vld [vmem:[#allocation5] sm:$0xff]  ;;  %v362_v31 = vld [vmem:[#allocation5 + $0x8] sm:$0xff] }
  0x48   : > { %404 = vmatpush.msra.mxu0 %v381_v10  ;;  %424 = vmatpush.msra.mxu1 %v382_v11  ;;  %v360_v32 = vld [vmem:[%s1364_s1] sm:$0xff]  ;;  %v487_v37 = vld [vmem:[#allocation8 + $0xe0] sm:$0xff]  ;;  %v393_v49 = vld [vmem:[#allocation7] sm:$0x3]  ;;  %p1140_p9 = pnand %p1139_p8, %p1135_p5 }
  0x49   : > { %v489_v33 = vld [vmem:[#allocation8 + $0xf0] sm:$0xff]  ;;  %v490_v35 = vld [vmem:[#allocation8 + $0xf8] sm:$0xff]  ;;  %v519_v38 = vld [vmem:[#allocation8 + $0x1e0] sm:$0xff]  ;;  %v395_v50 = vperm.slane %v393_v49, 0  ;;  %v396_v51 = vperm.slane %v393_v49, 1 }
  0x4a   : > { %405 = vmatpush.msra.mxu0 %v379_v12  ;;  %425 = vmatpush.msra.mxu1 %v380_v13  ;;  %v521_v34 = vld [vmem:[#allocation8 + $0x1f0] sm:$0xff]  ;;  %v522_v36 = vld [vmem:[#allocation8 + $0x1f8] sm:$0xff]  ;;  %v488_v39 = vld [vmem:[#allocation8 + $0xe8] sm:$0xff] }
  0x4b   : > { %529 = vmatpush.msra.mxu2 %v489_v33  ;;  %549 = vmatpush.msra.mxu3 %v521_v34  ;;  %v520_v40 = vld [vmem:[#allocation8 + $0x1e8] sm:$0xff]  ;;  %v485_v41 = vld [vmem:[#allocation8 + $0xd0] sm:$0xff]  ;;  %v486_v43 = vld [vmem:[#allocation8 + $0xd8] sm:$0xff] }
  0x4c   : > { %406 = vmatpush.msra.mxu0 %v377_v14  ;;  %426 = vmatpush.msra.mxu1 %v378_v15  ;;  %v517_v42 = vld [vmem:[#allocation8 + $0x1d0] sm:$0xff]  ;;  %v518_v44 = vld [vmem:[#allocation8 + $0x1d8] sm:$0xff]  ;;  %v483_v45 = vld [vmem:[#allocation8 + $0xc0] sm:$0xff] }
  0x4d   : > { %530 = vmatpush.msra.mxu2 %v487_v37  ;;  %550 = vmatpush.msra.mxu3 %v519_v38  ;;  %v515_v46 = vld [vmem:[#allocation8 + $0x1c0] sm:$0xff]  ;;  %v484_v47 = vld [vmem:[#allocation8 + $0xc8] sm:$0xff]  ;;  %v481_v59 = vld [vmem:[#allocation8 + $0xb0] sm:$0xff] }
  0x4e   : > { %407 = vmatpush.msra.mxu0 %v375_v16  ;;  %427 = vmatpush.msra.mxu1 %v376_v17  ;;  %v516_v48 = vld [vmem:[#allocation8 + $0x1c8] sm:$0xff]  ;;  %v513_v60 = vld [vmem:[#allocation8 + $0x1b0] sm:$0xff]  ;;  %v482_v61 = vld [vmem:[#allocation8 + $0xb8] sm:$0xff] }
  0x4f   : > { %531 = vmatpush.msra.mxu2 %v485_v41  ;;  %551 = vmatpush.msra.mxu3 %v517_v42  ;;  %v514_v62 = vld [vmem:[#allocation8 + $0x1b8] sm:$0xff]  ;;  %v479_v63 = vld [vmem:[#allocation8 + $0xa0] sm:$0xff]  ;;  %v480_v1 = vld [vmem:[#allocation8 + $0xa8] sm:$0xff] }
  0x50   : > { %408 = vmatpush.msra.mxu0 %v373_v18  ;;  %428 = vmatpush.msra.mxu1 %v374_v19  ;;  %v511_v0 = vld [vmem:[#allocation8 + $0x1a0] sm:$0xff]  ;;  %v512_v2 = vld [vmem:[#allocation8 + $0x1a8] sm:$0xff]  ;;  %v477_v3 = vld [vmem:[#allocation8 + $0x90] sm:$0xff] }
  0x51   : > { %532 = vmatpush.msra.mxu2 %v483_v45  ;;  %552 = vmatpush.msra.mxu3 %v515_v46  ;;  %v509_v4 = vld [vmem:[#allocation8 + $0x190] sm:$0xff]  ;;  %v478_v5 = vld [vmem:[#allocation8 + $0x98] sm:$0xff]  ;;  %v475_v7 = vld [vmem:[#allocation8 + $0x80] sm:$0xff] }
  0x52   : > { %409 = vmatpush.msra.mxu0 %v371_v20  ;;  %429 = vmatpush.msra.mxu1 %v372_v21  ;;  %v510_v6 = vld [vmem:[#allocation8 + $0x198] sm:$0xff]  ;;  %v507_v8 = vld [vmem:[#allocation8 + $0x180] sm:$0xff]  ;;  %v476_v9 = vld [vmem:[#allocation8 + $0x88] sm:$0xff] }
  0x53   : > { %533 = vmatpush.msra.mxu2 %v481_v59  ;;  %553 = vmatpush.msra.mxu3 %v513_v60  ;;  %v508_v10 = vld [vmem:[#allocation8 + $0x188] sm:$0xff]  ;;  %v473_v11 = vld [vmem:[#allocation8 + $0x70] sm:$0xff]  ;;  %v474_v13 = vld [vmem:[#allocation8 + $0x78] sm:$0xff] }
  0x54   : > { %410 = vmatpush.msra.mxu0 %v369_v22  ;;  %430 = vmatpush.msra.mxu1 %v370_v23  ;;  %v505_v12 = vld [vmem:[#allocation8 + $0x170] sm:$0xff]  ;;  %v506_v14 = vld [vmem:[#allocation8 + $0x178] sm:$0xff]  ;;  %v471_v15 = vld [vmem:[#allocation8 + $0x60] sm:$0xff] }
  0x55   : > { %534 = vmatpush.msra.mxu2 %v479_v63  ;;  %554 = vmatpush.msra.mxu3 %v511_v0  ;;  %v503_v16 = vld [vmem:[#allocation8 + $0x160] sm:$0xff]  ;;  %v472_v17 = vld [vmem:[#allocation8 + $0x68] sm:$0xff]  ;;  %v469_v19 = vld [vmem:[#allocation8 + $0x50] sm:$0xff] }
  0x56   : > { %411 = vmatpush.msra.mxu0 %v367_v24  ;;  %431 = vmatpush.msra.mxu1 %v368_v25  ;;  %v504_v18 = vld [vmem:[#allocation8 + $0x168] sm:$0xff]  ;;  %v501_v20 = vld [vmem:[#allocation8 + $0x150] sm:$0xff]  ;;  %v470_v21 = vld [vmem:[#allocation8 + $0x58] sm:$0xff] }
  0x57   : > { %535 = vmatpush.msra.mxu2 %v477_v3  ;;  %555 = vmatpush.msra.mxu3 %v509_v4  ;;  %v502_v22 = vld [vmem:[#allocation8 + $0x158] sm:$0xff]  ;;  %v467_v23 = vld [vmem:[#allocation8 + $0x40] sm:$0xff]  ;;  %v468_v25 = vld [vmem:[#allocation8 + $0x48] sm:$0xff] }
  0x58   : > { %412 = vmatpush.msra.mxu0 %v365_v26  ;;  %432 = vmatpush.msra.mxu1 %v366_v27  ;;  %v499_v24 = vld [vmem:[#allocation8 + $0x140] sm:$0xff]  ;;  %v500_v26 = vld [vmem:[#allocation8 + $0x148] sm:$0xff]  ;;  %v465_v27 = vld [vmem:[#allocation8 + $0x30] sm:$0xff] }
  0x59   : > { %536 = vmatpush.msra.mxu2 %v475_v7  ;;  %556 = vmatpush.msra.mxu3 %v507_v8  ;;  %v464_v33 = vld [vmem:[#allocation8 + $0x28] sm:$0xff]  ;;  %v462_v37 = vld [vmem:[#allocation8 + $0x18] sm:$0xff]  ;;  %v643_v60 = vld [vmem:[#allocation10 + $0x70] sm:$0xff] }
  0x5a   : > { %413 = vmatpush.msra.mxu0 %v363_v28  ;;  %433 = vmatpush.msra.mxu1 %v364_v29  ;;  %v497_v28 = vld [vmem:[#allocation8 + $0x130] sm:$0xff]  ;;  %v466_v29 = vld [vmem:[#allocation8 + $0x38] sm:$0xff]  ;;  %v496_v34 = vld [vmem:[#allocation8 + $0x128] sm:$0xff] }
  0x5b   : > { %537 = vmatpush.msra.mxu2 %v473_v11  ;;  %557 = vmatpush.msra.mxu3 %v505_v12  ;;  %v494_v38 = vld [vmem:[#allocation8 + $0x118] sm:$0xff]  ;;  %v460_v41 = vld [vmem:[#allocation8 + $0x8] sm:$0xff]  ;;  %v641_v0 = vld [vmem:[#allocation10 + $0x60] sm:$0xff] }
  0x5c   : > { %414 = vmatpush.msra.mxu0 %v361_v30  ;;  %434 = vmatpush.msra.mxu1 %v362_v31  ;;  %v498_v30 = vld [vmem:[#allocation8 + $0x138] sm:$0xff]  ;;  %v463_v31 = vld [vmem:[#allocation8 + $0x20] sm:$0xff]  ;;  %v492_v42 = vld [vmem:[#allocation8 + $0x108] sm:$0xff] }
  0x5d   : > { %415 = vmatmul.f32.vlgmr.msra.gmra.mxu0 %v360_v32  ;;  %435 = vmatmul.f32.vlgmr.msra.gmra.mxu1 %v360_v32  ;;  %v495_v32 = vld [vmem:[#allocation8 + $0x120] sm:$0xff]  ;;  %v660_v59 = vld [vmem:[#allocation10 + $0xf8] sm:$0xff]  ;;  %v658_v63 = vld [vmem:[#allocation10 + $0xe8] sm:$0xff] }
  0x5e   : > { %569 = vmatpush.msrb.mxu0 %v490_v35  ;;  %589 = vmatpush.msrb.mxu1 %v522_v36  ;;  %v461_v35 = vld [vmem:[#allocation8 + $0x10] sm:$0xff] }
  0x5f   : > { %538 = vmatpush.msra.mxu2 %v471_v15  ;;  %558 = vmatpush.msra.mxu3 %v503_v16  ;;  %v493_v36 = vld [vmem:[#allocation8 + $0x110] sm:$0xff]  ;;  %v656_v15 = vld [vmem:[#allocation10 + $0xd8] sm:$0xff] }
  0x60   : > { %570 = vmatpush.msrb.mxu0 %v488_v39  ;;  %590 = vmatpush.msrb.mxu1 %v520_v40  ;;  %v459_v39 = vld [vmem:[#allocation8] sm:$0xff]  ;;  %v639_v16 = vld [vmem:[#allocation10 + $0x50] sm:$0xff] }
  0x61   : > { %539 = vmatpush.msra.mxu2 %v469_v19  ;;  %559 = vmatpush.msra.mxu3 %v501_v20  ;;  %v491_v40 = vld [vmem:[#allocation8 + $0x100] sm:$0xff]  ;;  %v654_v19 = vld [vmem:[#allocation10 + $0xc8] sm:$0xff] }
  0x62   : > { %571 = vmatpush.msrb.mxu0 %v486_v43  ;;  %591 = vmatpush.msrb.mxu1 %v518_v44  ;;  %v637_v20 = vld [vmem:[#allocation10 + $0x40] sm:$0xff] }
  0x63   : > { %540 = vmatpush.msra.mxu2 %v467_v23  ;;  %560 = vmatpush.msra.mxu3 %v499_v24  ;;  %v652_v23 = vld [vmem:[#allocation10 + $0xb8] sm:$0xff]  ;;  %v635_v24 = vld [vmem:[#allocation10 + $0x30] sm:$0xff] }
  0x64   : > { %572 = vmatpush.msrb.mxu0 %v484_v47  ;;  %592 = vmatpush.msrb.mxu1 %v516_v48 }
  0x65   : > { %541 = vmatpush.msra.mxu2 %v465_v27  ;;  %561 = vmatpush.msra.mxu3 %v497_v28  ;;  %v650_v27 = vld [vmem:[#allocation10 + $0xa8] sm:$0xff]  ;;  %v633_v28 = vld [vmem:[#allocation10 + $0x20] sm:$0xff] }
  0x66   : > { %573 = vmatpush.msrb.mxu0 %v482_v61  ;;  %593 = vmatpush.msrb.mxu1 %v514_v62  ;;  %v659_v61 = vld [vmem:[#allocation10 + $0xf0] sm:$0xff]  ;;  %v642_v62 = vld [vmem:[#allocation10 + $0x68] sm:$0xff] }
  0x67   : > { %542 = vmatpush.msra.mxu2 %v463_v31  ;;  %562 = vmatpush.msra.mxu3 %v495_v32  ;;  %v648_v31 = vld [vmem:[#allocation10 + $0x98] sm:$0xff]  ;;  %v631_v32 = vld [vmem:[#allocation10 + $0x10] sm:$0xff] }
  0x68   : > { %574 = vmatpush.msrb.mxu0 %v480_v1  ;;  %594 = vmatpush.msrb.mxu1 %v512_v2 }
  0x69   : > { %543 = vmatpush.msra.mxu2 %v461_v35  ;;  %563 = vmatpush.msra.mxu3 %v493_v36  ;;  %v646_v35 = vld [vmem:[#allocation10 + $0x88] sm:$0xff]  ;;  %v629_v36 = vld [vmem:[#allocation10] sm:$0xff] }
  0x6a   : > { %575 = vmatpush.msrb.mxu0 %v478_v5  ;;  %595 = vmatpush.msrb.mxu1 %v510_v6 }
  0x6b   : > { %544 = vmatpush.msra.mxu2 %v459_v39  ;;  %564 = vmatpush.msra.mxu3 %v491_v40 }
  0x6c   : > { %576 = vmatpush.msrb.mxu0 %v476_v9  ;;  %596 = vmatpush.msrb.mxu1 %v508_v10 }
  0x6d   : > { %685 = vmatpush.msrb.mxu3 %v660_v59 }
  0x6e   : > { %577 = vmatpush.msrb.mxu0 %v474_v13  ;;  %597 = vmatpush.msrb.mxu1 %v506_v14  ;;  %v640_v14 = vld [vmem:[#allocation10 + $0x58] sm:$0xff] }
  0x6f   : > { %686 = vmatpush.msrb.mxu3 %v659_v61 }
  0x70   : > { %578 = vmatpush.msrb.mxu0 %v472_v17  ;;  %598 = vmatpush.msrb.mxu1 %v504_v18  ;;  %v655_v17 = vld [vmem:[#allocation10 + $0xd0] sm:$0xff]  ;;  %v638_v18 = vld [vmem:[#allocation10 + $0x48] sm:$0xff] }
  0x71   : > { %687 = vmatpush.msrb.mxu3 %v658_v63 }
  0x72   : > { %579 = vmatpush.msrb.mxu0 %v470_v21  ;;  %599 = vmatpush.msrb.mxu1 %v502_v22  ;;  %v653_v21 = vld [vmem:[#allocation10 + $0xc0] sm:$0xff]  ;;  %v636_v22 = vld [vmem:[#allocation10 + $0x38] sm:$0xff] }
  0x74   : > { %580 = vmatpush.msrb.mxu0 %v468_v25  ;;  %600 = vmatpush.msrb.mxu1 %v500_v26  ;;  %v651_v25 = vld [vmem:[#allocation10 + $0xb0] sm:$0xff]  ;;  %v634_v26 = vld [vmem:[#allocation10 + $0x28] sm:$0xff] }
  0x76   : > { %581 = vmatpush.msrb.mxu0 %v466_v29  ;;  %601 = vmatpush.msrb.mxu1 %v498_v30  ;;  %v649_v29 = vld [vmem:[#allocation10 + $0xa0] sm:$0xff]  ;;  %v632_v30 = vld [vmem:[#allocation10 + $0x18] sm:$0xff] }
  0x78   : > { %582 = vmatpush.msrb.mxu0 %v464_v33  ;;  %602 = vmatpush.msrb.mxu1 %v496_v34  ;;  %v647_v33 = vld [vmem:[#allocation10 + $0x90] sm:$0xff]  ;;  %v630_v34 = vld [vmem:[#allocation10 + $0x8] sm:$0xff] }
  0x7a   : > { %583 = vmatpush.msrb.mxu0 %v462_v37  ;;  %603 = vmatpush.msrb.mxu1 %v494_v38  ;;  %v645_v37 = vld [vmem:[#allocation10 + $0x80] sm:$0xff] }
  0x7c   : > { %584 = vmatpush.msrb.mxu0 %v460_v41  ;;  %604 = vmatpush.msrb.mxu1 %v492_v42 }
  0xda   : > { %v416_v52 = vpop.f32.mrf.mxu0  ;;  %v436_v53 = vpop.f32.mrf.mxu1 }
  0xdb   : > { %v1379_v54 = vadd.f32 %v416_v52, %v395_v50  ;;  %v1381_v55 = vadd.f32 %v436_v53, %v396_v51 }
  0xdd   : > { %v439_v56 = vmul.f32 %v1379_v54, %v1379_v54  ;;  %v440_v57 = vmul.f32 %v1381_v55, %v1381_v55 }
  0xdf   : > { %v441_v58 = vadd.f32 %v440_v57, %v439_v56 }
  0xe1   : > { %442 = vadd.xlane.f32.xlu0 %v441_v58  ;;  %v644_v58 = vld [vmem:[#allocation10 + $0x78] sm:$0xff] }
  0xe2   : > { %665 = vmatpush.msrb.mxu2 %v644_v58 }
  0xe4   : > { %666 = vmatpush.msrb.mxu2 %v643_v60 }
  0xe6   : > { %667 = vmatpush.msrb.mxu2 %v642_v62 }
  0xe8   : > { %668 = vmatpush.msrb.mxu2 %v641_v0 }
  0xea   : > { %669 = vmatpush.msrb.mxu2 %v640_v14 }
  0xec   : > { %670 = vmatpush.msrb.mxu2 %v639_v16 }
  0xee   : > { %671 = vmatpush.msrb.mxu2 %v638_v18 }
  0xf0   : > { %672 = vmatpush.msrb.mxu2 %v637_v20 }
  0xf2   : > { %673 = vmatpush.msrb.mxu2 %v636_v22 }
  0xf4   : > { %674 = vmatpush.msrb.mxu2 %v635_v24 }
  0xf6   : > { %675 = vmatpush.msrb.mxu2 %v634_v26 }
  0xf8   : > { %676 = vmatpush.msrb.mxu2 %v633_v28 }
  0xfa   : > { %677 = vmatpush.msrb.mxu2 %v632_v30 }
  0xfc   : > { %678 = vmatpush.msrb.mxu2 %v631_v32 }
  0xfe   : > { %679 = vmatpush.msrb.mxu2 %v630_v34 }
 0x100   : > { %680 = vmatpush.msrb.mxu2 %v629_v36 }
 0x154   : > { %v443_v43 = vpop.xlane.xlu0 %442 }
 0x155   : > { %v444_v44 = vmax.f32 %v443_v43, 1e-24 }
 0x157   : > { %958 = vrsqrt.f32 %v444_v44  ;;  %vm451_vm1 = vweird.f32 %v444_v44 }
 0x15d   : > { %v959_v45 = vpop.eup %958 }
 0x15e   : > { %v446_v46 = vmul.f32 %v959_v45, %v444_v44  ;;  %vm452_vm0 = vweird.f32 %v959_v45 }
 0x15f   : > { %vm453_vm2 = vmor %vm451_vm1, %vm452_vm0 }
 0x160   : > { %v447_v47 = vmul.f32 %v959_v45, %v446_v46 }
 0x162   : > { %v448_v48 = vmul.f32 0.5, %v447_v47 }
 0x164   : > { %v449_v49 = vsub.f32 1.5, %v448_v48 }
 0x166   : > { %v450_v50 = vmul.f32 %v959_v45, %v449_v49 }
 0x168   : > { %v454_v51 = vsel %vm453_vm2, %v959_v45, %v450_v50 }
 0x169   : > { %v455_v52 = vmul.f32 %v454_v51, %v1379_v54  ;;  %v456_v53 = vmul.f32 %v454_v51, %v1381_v55  ;;  %v657_v54 = vld [vmem:[#allocation10 + $0xe0] sm:$0xff]  ;;  %v523_v55 = vld [vmem:[%s1444_s4] sm:$0x3] }
 0x16a   : > { %688 = vmatpush.msrb.mxu3 %v657_v54  ;;  %v526_v1 = vperm.slane %v523_v55, 1  ;;  %v525_v4 = vperm.slane %v523_v55, 0  ;;  %v957_v51 = vld [vmem:[%s1446_s6] ss:$0 sm:$0xff] }
 0x16b   : > { %v457_v56 = vmax.f32 %v455_v52, 0.0  ;;  %v458_v57 = vmax.f32 %v456_v53, 0.0 }
 0x16c   : > { %689 = vmatpush.msrb.mxu3 %v656_v15 }
 0x16d   : > { %545 = vmatmul.f32.vlgmr.msra.gmra.mxu2 %v457_v56  ;;  %565 = vmatmul.f32.vlgmr.msra.gmra.mxu3 %v458_v57 }
 0x16e   : > { %585 = vmatmul.f32.vlgmr.msrb.gmra.mxu0 %v457_v56  ;;  %605 = vmatmul.f32.vlgmr.msrb.gmra.mxu1 %v458_v57 }
 0x16f   : > { %690 = vmatpush.msrb.mxu3 %v655_v17 }
 0x171   : > { %691 = vmatpush.msrb.mxu3 %v654_v19 }
 0x173   : > { %692 = vmatpush.msrb.mxu3 %v653_v21 }
 0x175   : > { %693 = vmatpush.msrb.mxu3 %v652_v23 }
 0x177   : > { %694 = vmatpush.msrb.mxu3 %v651_v25 }
 0x179   : > { %695 = vmatpush.msrb.mxu3 %v650_v27 }
 0x17b   : > { %696 = vmatpush.msrb.mxu3 %v649_v29 }
 0x17d   : > { %697 = vmatpush.msrb.mxu3 %v648_v31 }
 0x17f   : > { %698 = vmatpush.msrb.mxu3 %v647_v33 }
 0x181   : > { %699 = vmatpush.msrb.mxu3 %v646_v35 }
 0x183   : > { %700 = vmatpush.msrb.mxu3 %v645_v37 }
 0x1eb   : > { %v586_v2 = vpop.f32.mrf.mxu0  ;;  %v606_v5 = vpop.f32.mrf.mxu1 }
 0x1ec   : > { %v587_v3 = vadd.f32 %v586_v2, %v526_v1 }
 0x1ee   : > { %v1392_v7 = vadd.f32 %v606_v5, %v587_v3 }
 0x1f0   : > { %v546_v6 = vpop.f32.mrf.mxu2  ;;  %v566_v9 = vpop.f32.mrf.mxu3  ;;  %v610_v11 = vmul.f32 %v1392_v7, %v1392_v7 }
 0x1f1   : > { %v547_v8 = vadd.f32 %v546_v6, %v525_v4 }
 0x1f3   : > { %v1394_v10 = vadd.f32 %v566_v9, %v547_v8 }
 0x1f5   : > { %v609_v12 = vmul.f32 %v1394_v10, %v1394_v10 }
 0x1f7   : > { %v611_v13 = vadd.f32 %v610_v11, %v609_v12 }
 0x1f9   : > { %612 = vadd.xlane.f32.xlu0 %v611_v13 }
 0x26c   : > { %v613_v38 = vpop.xlane.xlu0 %612 }
 0x26d   : > { %v614_v39 = vmax.f32 %v613_v38, 1e-24 }
 0x26f   : > { %960 = vrsqrt.f32 %v614_v39  ;;  %vm621_vm4 = vweird.f32 %v614_v39 }
 0x275   : > { %v961_v40 = vpop.eup %960 }
 0x276   : > { %v616_v41 = vmul.f32 %v961_v40, %v614_v39  ;;  %vm622_vm3 = vweird.f32 %v961_v40 }
 0x277   : > { %vm623_vm5 = vmor %vm621_vm4, %vm622_vm3 }
 0x278   : > { %v617_v42 = vmul.f32 %v961_v40, %v616_v41 }
 0x27a   : > { %v618_v43 = vmul.f32 0.5, %v617_v42 }
 0x27c   : > { %v619_v44 = vsub.f32 1.5, %v618_v43 }
 0x27e   : > { %v620_v45 = vmul.f32 %v961_v40, %v619_v44 }
 0x280   : > { %v624_v46 = vsel %vm623_vm5, %v961_v40, %v620_v45 }
 0x281   : > { %v625_v47 = vmul.f32 %v624_v46, %v1394_v10  ;;  %v626_v48 = vmul.f32 %v624_v46, %v1392_v7 }
 0x283   : > { %v627_v49 = vmax.f32 %v625_v47, 0.0  ;;  %v628_v50 = vmax.f32 %v626_v48, 0.0 }
 0x285   : > { %681 = vmatmul.f32.vlgmr.msrb.gmra.mxu2 %v627_v49  ;;  %701 = vmatmul.f32.vlgmr.msrb.gmra.mxu3 %v628_v50 }
 0x308   : > { %v682_v52 = vpop.f32.mrf.mxu2  ;;  %v702_v56 = vpop.f32.mrf.mxu3 }
 0x309   : > { %v683_v53 = vadd.f32 %v957_v51, %v682_v52 }
 0x30b   : > { %v703_v57 = vadd.f32 %v702_v56, %v683_v53 }
 0x30d   : > { %v705_v58 = vmul.f32 %v703_v57, %v703_v57 }
 0x30f   : > { %706 = vadd.xlane.f32.xlu1 %v705_v58 }
 0x382   : > { %v707_v59 = vpop.xlane.xlu1 %706 }
 0x383   : > { %v708_v60 = vmax.f32 %v707_v59, 1e-24 }
 0x385   : > { %962 = vrsqrt.f32 %v708_v60  ;;  %vm715_vm7 = vweird.f32 %v708_v60 }
 0x38b   : > { %v963_v61 = vpop.eup %962 }
 0x38c   : > { %v710_v62 = vmul.f32 %v963_v61, %v708_v60  ;;  %vm716_vm6 = vweird.f32 %v963_v61 }
 0x38d   : > { %vm717_vm8 = vmor %vm715_vm7, %vm716_vm6 }
 0x38e   : > { %v711_v63 = vmul.f32 %v963_v61, %v710_v62 }
 0x390   : > { %v712_v0 = vmul.f32 0.5, %v711_v63 }
 0x392   : > { %v713_v54 = vsub.f32 1.5, %v712_v0 }
 0x394   : > { %v714_v55 = vmul.f32 %v963_v61, %v713_v54 }
 0x396   : > { %v718_v1 = vsel %vm717_vm8, %v963_v61, %v714_v55 }
 0x397   : > { %v719_v2 = vmul.f32 %v718_v1, %v703_v57 }
 0x399   : > { %964 = vtanh.f32 %v719_v2 }
 0x39f   : > { %v965_v3 = vpop.eup %964 }
 0x3a0   : > { %721 = vst [vmem:[%s359_s10] sm:$0xff] %v965_v3 }
 0x3a1   : > { %1143 = shalt.err (!%p1140_p9)
}
 0x3a2   : > { %884 = dma.vmem_to_hbm [thread:$0]  (%p1327_p4), %s736_s12, 128, %s738_s30, %s723_s21  }
 0x3a3 PF: > { %s749_s22 = sand.u32 1, %s1178_s24   ;;  %p1459_p10 = scmp.ge.s32.totalorder %s1190_s27, 2 }
 0x3a4   : > { %s750_s14 = scalar_lea.sflag [#allocation4], %s749_s22 }
 0x3a5   : > { %p904_p13 = pnand %p1459_p10, %p1331_p6 }
 0x3a7   : > { %p905_p11 = pneg %p904_p13 }
 0x3a9   : > { %1173 = dma.done.wait (%p905_p11), %s750_s14, 128  }
 0x3aa   : > { %1175 = vsyncadd (%p905_p11), %s750_s14, 4294967168  ;;  %p22_p0 = scmp.ge.s32.totalorder %s1301_s17, 4   ;;  %s1460_s24 = smov %s1182_s25 }
 0x3ab   : > { %s1461_s25 = smov %s1186_s26  ;;  %s1462_s26 = smov %s1312_s18 }
 0x3ac   : > { %s1463_s27 = smov %s1301_s17  ;;  %24 = sbr.rel (!%p22_p0) target bundleno = 10 (0xa), region = 109 }
 0x3b1   :  { %756 = vsyncpa [#allocation3], 1 }
 0x3b2   :  { %758 = vsyncpa [#allocation3 + $0x1], 1 }
 0x3b3   :  { %759 = vsyncpa [#allocation6], 1 }
 0x3b4   :  { %760 = vsyncpa [#allocation9], 1 }
 0x3b5   :  { %761 = vsyncpa [#allocation4], 1 }
 0x3b6   :  { %763 = vsyncpa [#allocation4 + $0x1], 1 }

</bundles_post_ra>
